<compile_context>
chip_gen: v5e
topology: v5e:2x2
jax: 0.10.0
libtpu: 0.0.40
codegen_flags: <defaults>
</compile_context>

<pallas_src>
import jax
import jax.numpy as jnp
from jax.experimental import pallas as pl
from jax.experimental.pallas import tpu as pltpu

EPS = 1e-5  # nn.BatchNorm1d default eps


def generator_kernel(x_ref, w1_ref, w2_ref, w3_ref, w4_ref, o_ref):
    """Fused MLP. Activations are [features(+1 ones row), batch_tile]."""
    h = x_ref[...]
    h = jnp.maximum(jnp.dot(w1_ref[...], h, preferred_element_type=jnp.float32), 0.0)
    h = jnp.maximum(jnp.dot(w2_ref[...], h, preferred_element_type=jnp.float32), 0.0)
    h = jnp.maximum(jnp.dot(w3_ref[...], h, preferred_element_type=jnp.float32), 0.0)
    out = jnp.dot(w4_ref[...], h, preferred_element_type=jnp.float32)
    o_ref[...] = out.astype(o_ref.dtype)


def _round_up(a, b):
    return ((a + b - 1) // b) * b


def _cdiv(a, b):
    return -(-a // b)


def _choose_tiling(n, *, max_block_n=4096, target_tiles=2):
    """Pad the batch to a multiple of 128 and split into k equal 128-multiple
    tiles (k >= target_tiles when the batch allows, tiles capped at max_block_n)."""
    n128 = _round_up(max(n, 1), 128)
    units = n128 // 128
    max_units = max(max_block_n // 128, 1)
    k = max(_cdiv(units, max_units), min(target_tiles, units))
    u = _cdiv(units, k)
    block_n = u * 128
    n_pad = k * block_n
    return block_n, n_pad, k


def fold_params(params):
    """Fold eval-mode BatchNorm AND the bias into augmented weight matrices.

    Hidden layers: [[W*s, s*(b-m)+beta], [0, 1]]  (shape [out+1, in+1]) so the
    trailing ones-row of the activations supplies the bias and survives ReLU.
    Last layer:    [W, b]                         (shape [out, in+1]).
    Input params use the PyTorch-ish storage from init_params (W [in,out],
    bias/BN params [1,out]); outputs are kernel-layout [out(,+1), in+1] f32.
    """
    (w1, b1, g1, be1, m1, v1,
     w2, b2, g2, be2, m2, v2,
     w3, b3, g3, be3, m3, v3,
     w4, b4) = params

    def fold_hidden(w, b, g, be, m, v):
        scale = g[0] * jax.lax.rsqrt(v[0] + EPS)             # [out]
        w_f = (w * scale[None, :]).T                         # [out, in]
        b_f = (scale * (b[0] - m[0]) + be[0])[:, None]       # [out, 1]
        out_dim, in_dim = w_f.shape
        top = jnp.concatenate([w_f, b_f], axis=1)            # [out, in+1]
        bot = jnp.concatenate(
            [jnp.zeros((1, in_dim), w_f.dtype), jnp.ones((1, 1), w_f.dtype)],
            axis=1)                                          # [1, in+1]
        return jnp.concatenate([top, bot], axis=0)           # [out+1, in+1]

    w1a = fold_hidden(w1, b1, g1, be1, m1, v1)
    w2a = fold_hidden(w2, b2, g2, be2, m2, v2)
    w3a = fold_hidden(w3, b3, g3, be3, m3, v3)
    w4a = jnp.concatenate([w4.T, b4[0][:, None]], axis=1)    # [out, in+1]
    return (w1a, w2a, w3a, w4a)


def generator_forward(x, params, *, max_block_n=4096):
    """x: [N, D_in] -> [N, 2]. params is the flat tuple from init_params."""
    N, D_in = x.shape
    folded = fold_params(params)
    aug_in = folded[0].shape[1]          # D_in + 1
    out_dim = folded[-1].shape[0]        # 2

    block_n, n_pad, num_tiles = _choose_tiling(N, max_block_n=max_block_n)

    # Append the ones-row (bias input), pad the batch to n_pad, transpose once
    # so the batch is the 128-lane axis. Padded columns carry 0 everywhere
    # (including the ones-row) and are sliced off at the end.
    x_aug = jnp.concatenate([x, jnp.ones((N, 1), x.dtype)], axis=1)   # [N, D_in+1]
    x_aug = jnp.pad(x_aug, ((0, n_pad - N), (0, 0)))                  # [n_pad, D_in+1]
    x_t = x_aug.T.astype(jnp.float32)                                 # [D_in+1, n_pad]

    in_specs = [pl.BlockSpec((aug_in, block_n), lambda i: (0, i))]
    in_specs += [pl.BlockSpec(w.shape, lambda i: (0, 0)) for w in folded]
    out_spec = pl.BlockSpec((out_dim, block_n), lambda i: (0, i))

    out_t = pl.pallas_call(
        generator_kernel,
        out_shape=jax.ShapeDtypeStruct((out_dim, n_pad), jnp.float32),
        grid=(num_tiles,),
        in_specs=in_specs,
        out_specs=out_spec,
        compiler_params=pltpu.CompilerParams(
            dimension_semantics=("parallel",)),
    )(x_t, *folded)

    return out_t.T[:N]                                                # [N, out_dim]


def init_params(key, D_in, H1, H2, H3, out_dim=2):
    """Deterministic synthetic parameters matching Generator.__init__ shapes."""
    dims = [(D_in, H1), (H1, H2), (H2, H3), (H3, out_dim)]
    keys = jax.random.split(key, 32)
    ki = iter(range(32))
    params = []
    for li, (fin, fout) in enumerate(dims):
        # Linear: weight stored transposed [in, out]; bias as [1, out].
        w = jax.random.normal(keys[next(ki)], (fin, fout), jnp.float32) * 0.1
        b = jax.random.normal(keys[next(ki)], (1, fout), jnp.float32) * 0.1
        params += [w, b]
        if li < 3:  # the first three linears are followed by BatchNorm1d
            gamma = 1.0 + 0.1 * jax.random.normal(keys[next(ki)], (1, fout), jnp.float32)
            beta = 0.1 * jax.random.normal(keys[next(ki)], (1, fout), jnp.float32)
            rmean = 0.1 * jax.random.normal(keys[next(ki)], (1, fout), jnp.float32)
            rvar = 1.0 + 0.1 * jax.random.uniform(keys[next(ki)], (1, fout), jnp.float32)
            params += [gamma, beta, rmean, rvar]
    return tuple(params)


def reference_forward(x, params):
    """Pure-JAX reference with the un-folded (PyTorch eval) math."""
    (w1, b1, g1, be1, m1, v1,
     w2, b2, g2, be2, m2, v2,
     w3, b3, g3, be3, m3, v3,
     w4, b4) = params

    def blk(h, w, b, g, be, m, v):
        h = h @ w + b
        h = g * (h - m) * jax.lax.rsqrt(v + EPS) + be
        return jnp.maximum(h, 0.0)

    h = blk(x, w1, b1, g1, be1, m1, v1)
    h = blk(h, w2, b2, g2, be2, m2, v2)
    h = blk(h, w3, b3, g3, be3, m3, v3)
    return h @ w4 + b4


if __name__ == "__main__":
    D_in, H1, H2, H3 = 2, 32, 32, 32
    N = 16  # batch

    key = jax.random.PRNGKey(0)
    kx, kp = jax.random.split(key)
    x = jax.random.normal(kx, (N, D_in), jnp.float32)
    params = init_params(kp, D_in, H1, H2, H3)

    out = generator_forward(x, params)
    out = jax.block_until_ready(out)

    ref = reference_forward(x, params)
    assert out.shape == (N, 2)
    assert jnp.allclose(out, ref, atol=1e-4, rtol=1e-4), "mismatch vs reference"

    print("KERNEL_OK")
</pallas_src>

<mosaic_0001>
module attributes {stable_mosaic.version = 11 : i64} {
  func.func @generator_kernel(%arg0: i32, %arg1: memref<3x128xf32, #tpu.memory_space<vmem>>, %arg2: memref<33x3xf32, #tpu.memory_space<vmem>>, %arg3: memref<33x33xf32, #tpu.memory_space<vmem>>, %arg4: memref<33x33xf32, #tpu.memory_space<vmem>>, %arg5: memref<2x33xf32, #tpu.memory_space<vmem>>, %arg6: memref<2x128xf32, #tpu.memory_space<vmem>>) attributes {dimension_semantics = [#tpu.dimension_semantics<parallel>], iteration_bounds = array<i64: 1>, scalar_prefetch = 0 : i64, scratch_operands = 0 : i64, tpu.core_type = #tpu.core_type<tc>, window_params = [{transform_indices = @transform_0, window_bounds = array<i64: 3, 128>}, {pipeline_mode = #tpu.pipeline_mode<synchronous>, transform_indices = @transform_1, window_bounds = array<i64: 33, 3>}, {pipeline_mode = #tpu.pipeline_mode<synchronous>, transform_indices = @transform_2, window_bounds = array<i64: 33, 33>}, {pipeline_mode = #tpu.pipeline_mode<synchronous>, transform_indices = @transform_3, window_bounds = array<i64: 33, 33>}, {pipeline_mode = #tpu.pipeline_mode<synchronous>, transform_indices = @transform_4, window_bounds = array<i64: 2, 33>}, {transform_indices = @transform_5, window_bounds = array<i64: 2, 128>}]} {
    %c0 = arith.constant 0 : index
    %c0_0 = arith.constant 0 : index
    %0 = vector.load %arg1[%c0, %c0_0] : memref<3x128xf32, #tpu.memory_space<vmem>>, vector<3x128xf32>
    %c0_1 = arith.constant 0 : index
    %c0_2 = arith.constant 0 : index
    %1 = vector.load %arg2[%c0_1, %c0_2] : memref<33x3xf32, #tpu.memory_space<vmem>>, vector<33x3xf32>
    %cst = arith.constant dense<0.000000e+00> : vector<33x128xf32>
    %2 = tpu.matmul %1, %0, %cst {dimension_numbers = #tpu.dot_dimension_numbers<[1], [0], [0], [1], [0, 0, 1, 1], [], []>} : vector<33x3xf32>, vector<3x128xf32>, vector<33x128xf32> -> vector<33x128xf32>
    %cst_3 = arith.constant 0.000000e+00 : f32
    %3 = vector.broadcast %cst_3 : f32 to vector<33x128xf32>
    %4 = arith.maximumf %2, %3 : vector<33x128xf32>
    %c0_4 = arith.constant 0 : index
    %c0_5 = arith.constant 0 : index
    %5 = vector.load %arg3[%c0_4, %c0_5] : memref<33x33xf32, #tpu.memory_space<vmem>>, vector<33x33xf32>
    %cst_6 = arith.constant dense<0.000000e+00> : vector<33x128xf32>
    %6 = tpu.matmul %5, %4, %cst_6 {dimension_numbers = #tpu.dot_dimension_numbers<[1], [0], [0], [1], [0, 0, 1, 1], [], []>} : vector<33x33xf32>, vector<33x128xf32>, vector<33x128xf32> -> vector<33x128xf32>
    %cst_7 = arith.constant 0.000000e+00 : f32
    %7 = vector.broadcast %cst_7 : f32 to vector<33x128xf32>
    %8 = arith.maximumf %6, %7 : vector<33x128xf32>
    %c0_8 = arith.constant 0 : index
    %c0_9 = arith.constant 0 : index
    %9 = vector.load %arg4[%c0_8, %c0_9] : memref<33x33xf32, #tpu.memory_space<vmem>>, vector<33x33xf32>
    %cst_10 = arith.constant dense<0.000000e+00> : vector<33x128xf32>
    %10 = tpu.matmul %9, %8, %cst_10 {dimension_numbers = #tpu.dot_dimension_numbers<[1], [0], [0], [1], [0, 0, 1, 1], [], []>} : vector<33x33xf32>, vector<33x128xf32>, vector<33x128xf32> -> vector<33x128xf32>
    %cst_11 = arith.constant 0.000000e+00 : f32
    %11 = vector.broadcast %cst_11 : f32 to vector<33x128xf32>
    %12 = arith.maximumf %10, %11 : vector<33x128xf32>
    %c0_12 = arith.constant 0 : index
    %c0_13 = arith.constant 0 : index
    %13 = vector.load %arg5[%c0_12, %c0_13] : memref<2x33xf32, #tpu.memory_space<vmem>>, vector<2x33xf32>
    %cst_14 = arith.constant dense<0.000000e+00> : vector<2x128xf32>
    %14 = tpu.matmul %13, %12, %cst_14 {dimension_numbers = #tpu.dot_dimension_numbers<[1], [0], [0], [1], [0, 0, 1, 1], [], []>} : vector<2x33xf32>, vector<33x128xf32>, vector<2x128xf32> -> vector<2x128xf32>
    %c0_15 = arith.constant 0 : index
    %c0_16 = arith.constant 0 : index
    %15 = vector.load %arg6[%c0_15, %c0_16] : memref<2x128xf32, #tpu.memory_space<vmem>>, vector<2x128xf32>
    tpu.vector_store %arg6[%c0_15, %c0_16], %14 {strides = array<i32>} : memref<2x128xf32, #tpu.memory_space<vmem>>, vector<2x128xf32>,
    return
  }
  func.func @transform_0(%arg0: i32) -> (i32, i32) {
    %c0_i32 = arith.constant 0 : i32
    %c0_i32_0 = arith.constant 0 : i32
    return %c0_i32, %arg0 : i32, i32
  }
  func.func @transform_1(%arg0: i32) -> (i32, i32) {
    %c0_i32 = arith.constant 0 : i32
    %c0_i32_0 = arith.constant 0 : i32
    %c0_i32_1 = arith.constant 0 : i32
    return %c0_i32, %c0_i32_0 : i32, i32
  }
  func.func @transform_2(%arg0: i32) -> (i32, i32) {
    %c0_i32 = arith.constant 0 : i32
    %c0_i32_0 = arith.constant 0 : i32
    %c0_i32_1 = arith.constant 0 : i32
    return %c0_i32, %c0_i32_0 : i32, i32
  }
  func.func @transform_3(%arg0: i32) -> (i32, i32) {
    %c0_i32 = arith.constant 0 : i32
    %c0_i32_0 = arith.constant 0 : i32
    %c0_i32_1 = arith.constant 0 : i32
    return %c0_i32, %c0_i32_0 : i32, i32
  }
  func.func @transform_4(%arg0: i32) -> (i32, i32) {
    %c0_i32 = arith.constant 0 : i32
    %c0_i32_0 = arith.constant 0 : i32
    %c0_i32_1 = arith.constant 0 : i32
    return %c0_i32, %c0_i32_0 : i32, i32
  }
  func.func @transform_5(%arg0: i32) -> (i32, i32) {
    %c0_i32 = arith.constant 0 : i32
    %c0_i32_0 = arith.constant 0 : i32
    return %c0_i32, %arg0 : i32, i32
  }
}

</mosaic_0001>

<bundles_post_ra>
// kernel: tpu_custom_call.1
= control target key start
LH: loop header
LB: loop body
LE: loop exit
PB: predicated region body
PF: predicated region fallthrough
CT: control target
= control target key end

     0   :  { %10 = vsyncpa [#allocation3], 0  ;;  %s445_s0 = inlined_call_operand.vmem [shape: f32[3,128], index: 0, kind: input, shape index: {}]   ;;  %s446_s1 = inlined_call_operand.vmem [shape: f32[33,3], index: 1, kind: input, shape index: {}]   ;;  %s447_s2 = inlined_call_operand.vmem [shape: f32[33,33], index: 2, kind: input, shape index: {}]   ;;  %s448_s3 = inlined_call_operand.hbm [shape: f32[33,33], index: 3, kind: input, shape index: {}]   ;;  %s449_s4 = inlined_call_operand.vmem [shape: f32[2,33], index: 4, kind: input, shape index: {}]   ;;  %s450_s5 = inlined_call_operand.hbm [shape: f32[2,128], index: 5, kind: output, shape index: {}]  }
   0x1   :  { %11 = vsyncpa [#allocation4], 0  ;;  %s22_s20 = sshll.u32 %s448_s3, 4  ;;  %s353_s21 = smov [#allocation2]   ;;  %s23_s20 = int_to_ptr.hbm [resolvable:$true] %s22_s20 }
   0x2   :  { %s24_s22 = sshll.u32 %s353_s21, 4  ;;  %s354_s23 = smov 128   ;;  %s25_s22 = int_to_ptr.vmem [resolvable:$true] %s24_s22 }
   0x3   :  { %s355_s24 = smov 8  }
   0x4   :  { %30 = dma.hbm_to_vmem [thread:$0]  %s23_s20, 640, %s25_s22, [#allocation3], %s354_s23, %s354_s23, %s355_s24  }
   0x5   :  { %349 = dma.done.wait [#allocation3], 640  }
   0x6   :  { %350 = vsyncadd [#allocation3], 4294966656  ;;  %vm59_vm0 = vcmask 1042432   ;;  %vm43_vm1 = vcmask 23552   ;;  %v37_v0 = vld [vmem:[%s445_s0] sm:$0x7] }
   0x7   :  { %v38_v1 = vld [vmem:[%s446_s1] sm:$0xff]  ;;  %267 = vmatpush.msk.msra.mxu0 %vm59_vm0, %v37_v0  ;;  %v39_v2 = vld [vmem:[%s446_s1 + $0x8] sm:$0xff]  ;;  %v40_v3 = vld [vmem:[%s446_s1 + $0x10] sm:$0xff]  ;;  %vm121_vm2 = vcmask 1040384   ;;  %vm105_vm3 = vcmask 269312   ;;  %s356_s20 = smov [#allocation5]  }
   0x8   :  { %268 = vmatmul.msk.f32.vlgmr.msra.gmra.mxu0 %vm43_vm1, %v38_v1  ;;  %v41_v4 = vld [vmem:[%s446_s1 + $0x18] sm:$0xff]  ;;  %v42_v5 = vld [vmem:[%s446_s1 + $0x20] sm:$0x1]  ;;  %v101_v18 = vld [vmem:[%s447_s2 + $0x8] sm:$0xff]  ;;  %s255_s21 = sshll.u32 %s356_s20, 4  ;;  %s257_s24 = sshll.u32 %s450_s5, 4  ;;  %s256_s21 = int_to_ptr.vmem [resolvable:$true] %s255_s21  ;;  %s258_s24 = int_to_ptr.hbm [resolvable:$true] %s257_s24 }
   0x9   :  { %v100_v16 = vld [vmem:[%s447_s2] sm:$0xff]  ;;  %v102_v19 = vld [vmem:[%s447_s2 + $0x10] sm:$0xff]  ;;  %v103_v20 = vld [vmem:[%s447_s2 + $0x18] sm:$0xff] }
   0xa   :  { %v104_v17 = vld [vmem:[%s447_s2 + $0x20] sm:$0x1]  ;;  %v163_v33 = vld [vmem:[#allocation2 + $0x8] sm:$0xff]  ;;  %v164_v34 = vld [vmem:[#allocation2 + $0x10] sm:$0xff] }
   0xb   :  { %v162_v31 = vld [vmem:[#allocation2] sm:$0xff]  ;;  %v165_v35 = vld [vmem:[#allocation2 + $0x18] sm:$0xff] }
   0xc   :  { %v166_v32 = vld [vmem:[#allocation2 + $0x20] sm:$0x1] }
   0xd   :  { %v222_v46 = vld [vmem:[%s449_s4] sm:$0x3] }
  0x10   :  { %269 = vmatmul.msk.f32.gmra.mxu0 %vm43_vm1, %v39_v2 }
  0x18   :  { %270 = vmatmul.msk.f32.gmra.mxu0 %vm43_vm1, %v40_v3 }
  0x20   :  { %271 = vmatmul.msk.f32.gmra.mxu0 %vm43_vm1, %v41_v4 }
  0x28   :  { %272 = vmatmul.msk.f32.gmra.mxu0 %vm43_vm1, %v42_v5 }
  0x85   :  { %v80_v6 = vpop.f32.mrf.mxu0 }
  0x86   :  { %v95_v15 = vmax.f32 %v80_v6, 0.0 }
  0x8d   :  { %v83_v7 = vpop.f32.mrf.mxu0 }
  0x8e   :  { %v96_v14 = vmax.f32 %v83_v7, 0.0 }
  0x95   :  { %v86_v8 = vpop.f32.mrf.mxu0 }
  0x96   :  { %v97_v13 = vmax.f32 %v86_v8, 0.0 }
  0x9d   :  { %v89_v9 = vpop.f32.mrf.mxu0 }
  0x9e   :  { %v98_v12 = vmax.f32 %v89_v9, 0.0 }
  0xa5   :  { %v92_v10 = vpop.f32.mrf.mxu0 }
  0xa6   :  { %v99_v11 = vmax.f32 %v92_v10, 0.0 }
  0xa8   :  { %273 = vmatpush.msk.msra.mxu1 %vm121_vm2, %v99_v11  ;;  %287 = vmatpush.msk.msra.mxu3 %vm121_vm2, %v99_v11 }
  0xaa   :  { %137 = vmatpush.msra.mxu1 %v98_v12  ;;  %288 = vmatpush.msra.mxu3 %v98_v12 }
  0xac   :  { %138 = vmatpush.msra.mxu1 %v97_v13  ;;  %289 = vmatpush.msra.mxu3 %v97_v13 }
  0xae   :  { %139 = vmatpush.msra.mxu1 %v96_v14  ;;  %290 = vmatpush.msra.mxu3 %v96_v14 }
  0xb0   :  { %140 = vmatpush.msra.mxu1 %v95_v15  ;;  %291 = vmatpush.msra.mxu3 %v95_v15 }
  0xb1   :  { %274 = vmatmul.msk.f32.vlgmr.msra.gmra.mxu1 %vm105_vm3, %v100_v16  ;;  %278 = vmatmul.msk.f32.vlgmr.msra.gmra.mxu3 %vm105_vm3, %v104_v17 }
  0xb9   :  { %275 = vmatmul.msk.f32.gmra.mxu1 %vm105_vm3, %v101_v18 }
  0xc1   :  { %276 = vmatmul.msk.f32.gmra.mxu1 %vm105_vm3, %v102_v19 }
  0xc9   :  { %277 = vmatmul.msk.f32.gmra.mxu1 %vm105_vm3, %v103_v20 }
 0x12e   :  { %v142_v21 = vpop.f32.mrf.mxu1 }
 0x12f   :  { %v157_v30 = vmax.f32 %v142_v21, 0.0 }
 0x134   :  { %v154_v22 = vpop.f32.mrf.mxu3 }
 0x135   :  { %v161_v23 = vmax.f32 %v154_v22, 0.0 }
 0x136   :  { %v145_v24 = vpop.f32.mrf.mxu1 }
 0x137   :  { %279 = vmatpush.msk.msra.mxu2 %vm121_vm2, %v161_v23  ;;  %292 = vmatpush.msk.msrb.mxu3 %vm121_vm2, %v161_v23  ;;  %v158_v29 = vmax.f32 %v145_v24, 0.0 }
 0x13e   :  { %v148_v25 = vpop.f32.mrf.mxu1 }
 0x13f   :  { %v159_v28 = vmax.f32 %v148_v25, 0.0 }
 0x146   :  { %v151_v26 = vpop.f32.mrf.mxu1 }
 0x147   :  { %v160_v27 = vmax.f32 %v151_v26, 0.0 }
 0x149   :  { %197 = vmatpush.msra.mxu2 %v160_v27  ;;  %293 = vmatpush.msrb.mxu3 %v160_v27 }
 0x14b   :  { %198 = vmatpush.msra.mxu2 %v159_v28  ;;  %294 = vmatpush.msrb.mxu3 %v159_v28 }
 0x14d   :  { %199 = vmatpush.msra.mxu2 %v158_v29  ;;  %295 = vmatpush.msrb.mxu3 %v158_v29 }
 0x14f   :  { %200 = vmatpush.msra.mxu2 %v157_v30  ;;  %296 = vmatpush.msrb.mxu3 %v157_v30 }
 0x150   :  { %280 = vmatmul.msk.f32.vlgmr.msra.gmra.mxu2 %vm105_vm3, %v162_v31  ;;  %284 = vmatmul.msk.f32.vlgmr.msrb.gmra.mxu3 %vm105_vm3, %v166_v32 }
 0x158   :  { %281 = vmatmul.msk.f32.gmra.mxu2 %vm105_vm3, %v163_v33 }
 0x160   :  { %282 = vmatmul.msk.f32.gmra.mxu2 %vm105_vm3, %v164_v34 }
 0x168   :  { %283 = vmatmul.msk.f32.gmra.mxu2 %vm105_vm3, %v165_v35 }
 0x1d3   :  { %v202_v36 = vpop.f32.mrf.mxu2  ;;  %v214_v37 = vpop.f32.mrf.mxu3 }
 0x1d4   :  { %v221_v38 = vmax.f32 %v214_v37, 0.0  ;;  %v217_v45 = vmax.f32 %v202_v36, 0.0 }
 0x1d6   :  { %285 = vmatpush.msk.msra.mxu3 %vm121_vm2, %v221_v38 }
 0x1db   :  { %v205_v39 = vpop.f32.mrf.mxu2 }
 0x1dc   :  { %v218_v44 = vmax.f32 %v205_v39, 0.0 }
 0x1e3   :  { %v208_v40 = vpop.f32.mrf.mxu2 }
 0x1e4   :  { %v219_v43 = vmax.f32 %v208_v40, 0.0 }
 0x1eb   :  { %v211_v41 = vpop.f32.mrf.mxu2 }
 0x1ec   :  { %v220_v42 = vmax.f32 %v211_v41, 0.0 }
 0x1ee   :  { %241 = vmatpush.msra.mxu3 %v220_v42 }
 0x1f0   :  { %242 = vmatpush.msra.mxu3 %v219_v43 }
 0x1f2   :  { %243 = vmatpush.msra.mxu3 %v218_v44 }
 0x1f4   :  { %244 = vmatpush.msra.mxu3 %v217_v45 }
 0x1f5   :  { %286 = vmatmul.msk.f32.vlgmr.msra.gmra.mxu3 %vm105_vm3, %v222_v46 }
 0x278   :  { %v246_v47 = vpop.f32.mrf.mxu3 }
 0x279   :  { %249 = vst [vmem:[#allocation5] sm:$0x3] %v246_v47 }
 0x27a   :  { %260 = dma.vmem_to_hbm [thread:$0]  %s256_s21, 32, %s258_s24, [#allocation4]  }
 0x27b   :  { %351 = dma.done.wait [#allocation4], 32  }
 0x27c   :  { %352 = vsyncadd [#allocation4], 4294967264 }
 0x27d   :  { %265 = vsyncpa [#allocation3], 1 }
 0x27e   :  { %266 = vsyncpa [#allocation4], 1 }

</bundles_post_ra>
